<compile_context>
chip_gen: v6e
topology: v6e:2x2x1
jax: 0.10.0
libtpu: 0.0.40
codegen_flags: <defaults>
</compile_context>

<pallas_src>
import numpy as np
import jax
import jax.numpy as jnp
from jax.experimental import pallas as pl
from jax.experimental.pallas import tpu as pltpu


# ----------------------------------------------------------------------------
# Deterministic parameter init (numpy port of convolution_aware / init_conv).
# ----------------------------------------------------------------------------
def convolution_aware_np(shape, eps_std=0.05, seed=0):
    rng = np.random.RandomState(seed)
    n_out, n_in, row, col = shape
    fan_in = n_in * row * col
    kernel_shape = (row, col)
    kernel_fft_shape = np.fft.rfft2(np.zeros(kernel_shape)).shape
    basis_size = int(np.prod(kernel_fft_shape))
    if basis_size == 1:
        x = rng.normal(0.0, eps_std, (n_out, n_in, basis_size))
    else:
        nbb = n_in // basis_size + 1
        x = rng.normal(0.0, 1.0, (n_out, nbb, basis_size, basis_size))
        x = x + np.transpose(x, (0, 1, 3, 2)) * (1 - np.eye(basis_size))
        u, _, v = np.linalg.svd(x)
        x = np.transpose(u, (0, 1, 3, 2))
        x = np.reshape(x, (n_out, -1, basis_size))
        x = x[:, :n_in, :]
    x = np.reshape(x, (n_out, n_in) + kernel_fft_shape)
    x = np.fft.irfft2(x, kernel_shape) + rng.normal(
        0, eps_std, (n_out, n_in) + kernel_shape
    )
    x = x * np.sqrt(2 / fan_in / np.var(x))
    return x.astype(np.float32)


# ----------------------------------------------------------------------------
# Fused ResidualBlock forward (NCHW in / NCHW out).
# ----------------------------------------------------------------------------
def residual_block(x_nchw, w1, b1, w2, b2):
    N, C, H, W = x_nchw.shape
    KH = KW = 3
    Wp = W + 2                       # padded row width
    M = H * Wp                       # flattened output extent (incl. 2 junk cols per row)
    Ppad = (H + 3) * Wp              # single-pad flattened length, >= (H+2)*Wp + 2

    # Single padded copy: pad H by (1,2) and W by (1,1); the flatten is free.
    xpf = jnp.pad(x_nchw, ((0, 0), (0, 0), (1, 2), (1, 1))).reshape(N, C, Ppad)

    # (Cout, Cin, kh, kw) -> (Cout, 9*Cin), tap-major / cin-minor (matches the in-kernel
    # tap stack ordering). Weights are MXU-only -> cast to bf16 in the wrapper.
    w1m = jnp.transpose(w1, (0, 2, 3, 1)).reshape(C, KH * KW * C).astype(jnp.bfloat16)
    w2m = jnp.transpose(w2, (0, 2, 3, 1)).reshape(C, KH * KW * C).astype(jnp.bfloat16)
    b1c = b1.reshape(C, 1).astype(jnp.float32)
    b2c = b2.reshape(C, 1).astype(jnp.float32)

    def kernel(x_ref, w1_ref, b1_ref, w2_ref, b2_ref, o_ref, ypad_ref, stack_ref):
        def conv3x3(src_ref, w_ref, b_ref):
            # Stack the 9 lane-shifted tap slices sublane-wise into the VMEM scratch
            # (tap-major, cin-minor), then do ONE (Cout, 9*Cin)@(9*Cin, M) MXU matmul
            # with bf16 operands and an f32 accumulator.
            for kh in range(KH):
                for kw in range(KW):
                    t = kh * KW + kw
                    off = kh * Wp + kw
                    stack_ref[t * C:(t + 1) * C, :] = src_ref[:, off:off + M]
            acc = jnp.dot(w_ref[...], stack_ref[...].astype(jnp.bfloat16),
                          preferred_element_type=jnp.float32)
            return acc + b_ref[...]

        # In-kernel junk-column mask: keep positions with (m % Wp) < W. Implemented with
        # exact f32 arithmetic (all indices < 2^23) to avoid vector integer div/mod.
        m_idx = jax.lax.broadcasted_iota(jnp.int32, (1, M), 1).astype(jnp.float32)
        row_f = jnp.floor((m_idx + 0.5) * (1.0 / Wp))
        col_f = m_idx - row_f * Wp
        keep = col_f < W                                  # (1, M) bool

        y1 = conv3x3(x_ref, w1_ref, b1_ref)
        y1 = jnp.maximum(y1, 0.2 * y1)                    # LeakyReLU(0.2)
        y1 = jnp.where(keep, y1, 0.0)                     # zero junk cols (= pad cols of ypad)

        # Re-pad conv1 activation: interior store + zero ONLY the two border regions
        # (every element of ypad is written every grid step -> megacore-safe).
        ypad_ref[:, Wp + 1:Wp + 1 + M] = y1
        ypad_ref[:, 0:Wp + 1] = jnp.zeros((C, Wp + 1), jnp.float32)
        ypad_ref[:, Wp + 1 + M:Ppad] = jnp.zeros((C, Ppad - (Wp + 1 + M)), jnp.float32)

        y2 = conv3x3(ypad_ref, w2_ref, b2_ref)
        out = y2 + x_ref[:, Wp + 1:Wp + 1 + M]            # residual add in f32
        o_ref[...] = jnp.maximum(out, 0.2 * out)          # LeakyReLU(0.2)

    flops = 2 * 2 * N * H * W * (KH * KW * C) * C         # two 3x3 convs
    bytes_accessed = (4 * N * C * Ppad            # padded input (f32)
                      + 2 * 2 * C * KH * KW * C   # bf16 weights
                      + 2 * 4 * C                 # biases
                      + 4 * N * C * M)            # output (f32)

    out_flat = pl.pallas_call(
        kernel,
        out_shape=jax.ShapeDtypeStruct((N, C, M), jnp.float32),
        grid_spec=pltpu.PrefetchScalarGridSpec(
            num_scalar_prefetch=0,
            grid=(N,),
            in_specs=[
                pl.BlockSpec((None, C, Ppad), lambda n: (n, 0, 0)),
                pl.BlockSpec((C, KH * KW * C), lambda n: (0, 0)),
                pl.BlockSpec((C, 1), lambda n: (0, 0)),
                pl.BlockSpec((C, KH * KW * C), lambda n: (0, 0)),
                pl.BlockSpec((C, 1), lambda n: (0, 0)),
            ],
            out_specs=pl.BlockSpec((None, C, M), lambda n: (n, 0, 0)),
            scratch_shapes=[
                pltpu.VMEM((C, Ppad), jnp.float32),          # re-padded conv1 activation
                pltpu.VMEM((KH * KW * C, M), jnp.float32),   # stacked-tap matmul operand
            ],
        ),
        compiler_params=pltpu.CompilerParams(
            dimension_semantics=("parallel",),
            vmem_limit_bytes=32 * 1024 * 1024,
        ),
        cost_estimate=pl.CostEstimate(
            flops=flops, transcendentals=0, bytes_accessed=bytes_accessed),
    )(xpf, w1m, b1c, w2m, b2c)

    # (N, C, H*Wp) -> drop the 2 junk columns per row -> NCHW. No transpose needed.
    return out_flat.reshape(N, C, H, Wp)[:, :, :, :W]


if __name__ == "__main__":
    # Small shapes consistent with the module: batch=2, ch=4, 16x16 spatial.
    N, C, H, W = 2, 4, 16, 16

    # Deterministic parameters (convolution_aware init, zero biases per init_conv).
    w1 = jnp.asarray(convolution_aware_np((C, C, 3, 3), seed=0))
    w2 = jnp.asarray(convolution_aware_np((C, C, 3, 3), seed=1))
    b1 = jnp.zeros((C,), jnp.float32)
    b2 = jnp.zeros((C,), jnp.float32)

    # Deterministic input.
    x = jax.random.normal(jax.random.PRNGKey(0), (N, C, H, W), dtype=jnp.float32)

    out = jax.block_until_ready(residual_block(x, w1, b1, w2, b2))

    # Pure-JAX f32 reference for validation.
    def leaky(v):
        return jnp.maximum(v, 0.2 * v)

    def conv(v, w, b):
        return jax.lax.conv_general_dilated(
            v, w, window_strides=(1, 1), padding=((1, 1), (1, 1)),
            dimension_numbers=("NCHW", "OIHW", "NCHW"),
        ) + b[None, :, None, None]

    ref = leaky(conv(leaky(conv(x, w1, b1)), w2, b2) + x)

    assert out.shape == (N, C, H, W), out.shape
    # Tolerance loosened vs. the f32 reference because the kernel uses bf16 MXU operands
    # (f32 accumulation / elementwise); a logic bug would produce O(1) errors and still fail.
    np.testing.assert_allclose(np.asarray(out), np.asarray(ref), rtol=5e-2, atol=5e-2)
    print("KERNEL_OK")
</pallas_src>

<mosaic_0001>
module attributes {stable_mosaic.version = 11 : i64} {
  func.func @kernel(%arg0: i32, %arg1: memref<1x4x342xf32, #tpu.memory_space<vmem>>, %arg2: memref<4x36xbf16, #tpu.memory_space<vmem>>, %arg3: memref<4x1xf32, #tpu.memory_space<vmem>>, %arg4: memref<4x36xbf16, #tpu.memory_space<vmem>>, %arg5: memref<4x1xf32, #tpu.memory_space<vmem>>, %arg6: memref<1x4x288xf32, #tpu.memory_space<vmem>>, %arg7: memref<4x342xf32, #tpu.memory_space<vmem>>, %arg8: memref<36x288xf32, #tpu.memory_space<vmem>>) attributes {dimension_semantics = [#tpu.dimension_semantics<parallel>], iteration_bounds = array<i64: 2>, scalar_prefetch = 0 : i64, scratch_operands = 2 : i64, tpu.core_type = #tpu.core_type<tc>, window_params = [{transform_indices = @transform_0, window_bounds = array<i64: 1, 4, 342>}, {pipeline_mode = #tpu.pipeline_mode<synchronous>, transform_indices = @transform_1, window_bounds = array<i64: 4, 36>}, {pipeline_mode = #tpu.pipeline_mode<synchronous>, transform_indices = @transform_2, window_bounds = array<i64: 4, 1>}, {pipeline_mode = #tpu.pipeline_mode<synchronous>, transform_indices = @transform_3, window_bounds = array<i64: 4, 36>}, {pipeline_mode = #tpu.pipeline_mode<synchronous>, transform_indices = @transform_4, window_bounds = array<i64: 4, 1>}, {transform_indices = @transform_5, window_bounds = array<i64: 1, 4, 288>}]} {
    %0 = tpu.iota {dimensions = array<i32: 1>} : vector<1x288xi32>
    %1 = arith.sitofp %0 : vector<1x288xi32> to vector<1x288xf32>
    %cst = arith.constant 5.000000e-01 : f32
    %2 = vector.broadcast %cst : f32 to vector<1x288xf32>
    %3 = arith.addf %1, %2 : vector<1x288xf32>
    %cst_0 = arith.constant 0.055555556 : f32
    %4 = vector.broadcast %cst_0 : f32 to vector<1x288xf32>
    %5 = arith.mulf %3, %4 : vector<1x288xf32>
    %6 = math.floor %5 : vector<1x288xf32>
    %cst_1 = arith.constant 1.800000e+01 : f32
    %7 = vector.broadcast %cst_1 : f32 to vector<1x288xf32>
    %8 = arith.mulf %6, %7 : vector<1x288xf32>
    %9 = arith.subf %1, %8 : vector<1x288xf32>
    %cst_2 = arith.constant 1.600000e+01 : f32
    %10 = vector.broadcast %cst_2 : f32 to vector<1x288xf32>
    %11 = arith.cmpf olt, %9, %10 : vector<1x288xf32>
    %c0 = arith.constant 0 : index
    %c0_3 = arith.constant 0 : index
    %c0_4 = arith.constant 0 : index
    %12 = vector.load %arg1[%c0, %c0_3, %c0_4] : memref<1x4x342xf32, #tpu.memory_space<vmem>>, vector<1x4x288xf32>
    %13 = vector.shape_cast %12 : vector<1x4x288xf32> to vector<4x288xf32>
    %c0_5 = arith.constant 0 : index
    %c0_6 = arith.constant 0 : index
    %14 = vector.load %arg8[%c0_5, %c0_6] : memref<36x288xf32, #tpu.memory_space<vmem>>, vector<4x288xf32>
    tpu.vector_store %arg8[%c0_5, %c0_6], %13 {strides = array<i32>} : memref<36x288xf32, #tpu.memory_space<vmem>>, vector<4x288xf32>,
    %c0_7 = arith.constant 0 : index
    %c0_8 = arith.constant 0 : index
    %c1 = arith.constant 1 : index
    %15 = vector.load %arg1[%c0_7, %c0_8, %c1] : memref<1x4x342xf32, #tpu.memory_space<vmem>>, vector<1x4x288xf32>
    %16 = vector.shape_cast %15 : vector<1x4x288xf32> to vector<4x288xf32>
    %c4 = arith.constant 4 : index
    %c0_9 = arith.constant 0 : index
    %17 = vector.load %arg8[%c4, %c0_9] : memref<36x288xf32, #tpu.memory_space<vmem>>, vector<4x288xf32>
    tpu.vector_store %arg8[%c4, %c0_9], %16 {strides = array<i32>} : memref<36x288xf32, #tpu.memory_space<vmem>>, vector<4x288xf32>,
    %c0_10 = arith.constant 0 : index
    %c0_11 = arith.constant 0 : index
    %c2 = arith.constant 2 : index
    %18 = vector.load %arg1[%c0_10, %c0_11, %c2] : memref<1x4x342xf32, #tpu.memory_space<vmem>>, vector<1x4x288xf32>
    %19 = vector.shape_cast %18 : vector<1x4x288xf32> to vector<4x288xf32>
    %c8 = arith.constant 8 : index
    %c0_12 = arith.constant 0 : index
    %20 = vector.load %arg8[%c8, %c0_12] : memref<36x288xf32, #tpu.memory_space<vmem>>, vector<4x288xf32>
    tpu.vector_store %arg8[%c8, %c0_12], %19 {strides = array<i32>} : memref<36x288xf32, #tpu.memory_space<vmem>>, vector<4x288xf32>,
    %c0_13 = arith.constant 0 : index
    %c0_14 = arith.constant 0 : index
    %c18 = arith.constant 18 : index
    %21 = vector.load %arg1[%c0_13, %c0_14, %c18] : memref<1x4x342xf32, #tpu.memory_space<vmem>>, vector<1x4x288xf32>
    %22 = vector.shape_cast %21 : vector<1x4x288xf32> to vector<4x288xf32>
    %c12 = arith.constant 12 : index
    %c0_15 = arith.constant 0 : index
    %23 = vector.load %arg8[%c12, %c0_15] : memref<36x288xf32, #tpu.memory_space<vmem>>, vector<4x288xf32>
    tpu.vector_store %arg8[%c12, %c0_15], %22 {strides = array<i32>} : memref<36x288xf32, #tpu.memory_space<vmem>>, vector<4x288xf32>,
    %c0_16 = arith.constant 0 : index
    %c0_17 = arith.constant 0 : index
    %c19 = arith.constant 19 : index
    %24 = vector.load %arg1[%c0_16, %c0_17, %c19] : memref<1x4x342xf32, #tpu.memory_space<vmem>>, vector<1x4x288xf32>
    %25 = vector.shape_cast %24 : vector<1x4x288xf32> to vector<4x288xf32>
    %c16 = arith.constant 16 : index
    %c0_18 = arith.constant 0 : index
    %26 = vector.load %arg8[%c16, %c0_18] : memref<36x288xf32, #tpu.memory_space<vmem>>, vector<4x288xf32>
    tpu.vector_store %arg8[%c16, %c0_18], %25 {strides = array<i32>} : memref<36x288xf32, #tpu.memory_space<vmem>>, vector<4x288xf32>,
    %c0_19 = arith.constant 0 : index
    %c0_20 = arith.constant 0 : index
    %c20 = arith.constant 20 : index
    %27 = vector.load %arg1[%c0_19, %c0_20, %c20] : memref<1x4x342xf32, #tpu.memory_space<vmem>>, vector<1x4x288xf32>
    %28 = vector.shape_cast %27 : vector<1x4x288xf32> to vector<4x288xf32>
    %c20_21 = arith.constant 20 : index
    %c0_22 = arith.constant 0 : index
    %29 = vector.load %arg8[%c20_21, %c0_22] : memref<36x288xf32, #tpu.memory_space<vmem>>, vector<4x288xf32>
    tpu.vector_store %arg8[%c20_21, %c0_22], %28 {strides = array<i32>} : memref<36x288xf32, #tpu.memory_space<vmem>>, vector<4x288xf32>,
    %c0_23 = arith.constant 0 : index
    %c0_24 = arith.constant 0 : index
    %c36 = arith.constant 36 : index
    %30 = vector.load %arg1[%c0_23, %c0_24, %c36] : memref<1x4x342xf32, #tpu.memory_space<vmem>>, vector<1x4x288xf32>
    %31 = vector.shape_cast %30 : vector<1x4x288xf32> to vector<4x288xf32>
    %c24 = arith.constant 24 : index
    %c0_25 = arith.constant 0 : index
    %32 = vector.load %arg8[%c24, %c0_25] : memref<36x288xf32, #tpu.memory_space<vmem>>, vector<4x288xf32>
    tpu.vector_store %arg8[%c24, %c0_25], %31 {strides = array<i32>} : memref<36x288xf32, #tpu.memory_space<vmem>>, vector<4x288xf32>,
    %c0_26 = arith.constant 0 : index
    %c0_27 = arith.constant 0 : index
    %c37 = arith.constant 37 : index
    %33 = vector.load %arg1[%c0_26, %c0_27, %c37] : memref<1x4x342xf32, #tpu.memory_space<vmem>>, vector<1x4x288xf32>
    %34 = vector.shape_cast %33 : vector<1x4x288xf32> to vector<4x288xf32>
    %c28 = arith.constant 28 : index
    %c0_28 = arith.constant 0 : index
    %35 = vector.load %arg8[%c28, %c0_28] : memref<36x288xf32, #tpu.memory_space<vmem>>, vector<4x288xf32>
    tpu.vector_store %arg8[%c28, %c0_28], %34 {strides = array<i32>} : memref<36x288xf32, #tpu.memory_space<vmem>>, vector<4x288xf32>,
    %c0_29 = arith.constant 0 : index
    %c0_30 = arith.constant 0 : index
    %c38 = arith.constant 38 : index
    %36 = vector.load %arg1[%c0_29, %c0_30, %c38] : memref<1x4x342xf32, #tpu.memory_space<vmem>>, vector<1x4x288xf32>
    %37 = vector.shape_cast %36 : vector<1x4x288xf32> to vector<4x288xf32>
    %c32 = arith.constant 32 : index
    %c0_31 = arith.constant 0 : index
    %38 = vector.load %arg8[%c32, %c0_31] : memref<36x288xf32, #tpu.memory_space<vmem>>, vector<4x288xf32>
    tpu.vector_store %arg8[%c32, %c0_31], %37 {strides = array<i32>} : memref<36x288xf32, #tpu.memory_space<vmem>>, vector<4x288xf32>,
    %c0_32 = arith.constant 0 : index
    %c0_33 = arith.constant 0 : index
    %39 = vector.load %arg2[%c0_32, %c0_33] : memref<4x36xbf16, #tpu.memory_space<vmem>>, vector<4x36xbf16>
    %c0_34 = arith.constant 0 : index
    %c0_35 = arith.constant 0 : index
    %40 = vector.load %arg8[%c0_34, %c0_35] : memref<36x288xf32, #tpu.memory_space<vmem>>, vector<36x288xf32>
    %41 = arith.truncf %40 : vector<36x288xf32> to vector<36x288xbf16>
    %cst_36 = arith.constant dense<0.000000e+00> : vector<4x288xf32>
    %42 = tpu.matmul %39, %41, %cst_36 {dimension_numbers = #tpu.dot_dimension_numbers<[1], [0], [0], [1], [0, 0, 1, 1], [], []>} : vector<4x36xbf16>, vector<36x288xbf16>, vector<4x288xf32> -> vector<4x288xf32>
    %c0_37 = arith.constant 0 : index
    %c0_38 = arith.constant 0 : index
    %43 = vector.load %arg3[%c0_37, %c0_38] : memref<4x1xf32, #tpu.memory_space<vmem>>, vector<4x1xf32>
    %44 = vector.broadcast %43 : vector<4x1xf32> to vector<4x288xf32>
    %45 = arith.addf %42, %44 : vector<4x288xf32>
    %cst_39 = arith.constant 2.000000e-01 : f32
    %46 = vector.broadcast %cst_39 : f32 to vector<4x288xf32>
    %47 = arith.mulf %46, %45 : vector<4x288xf32>
    %48 = arith.maximumf %45, %47 : vector<4x288xf32>
    %cst_40 = arith.constant 0.000000e+00 : f32
    %49 = vector.shape_cast %11 : vector<1x288xi1> to vector<1x288xi1>
    %50 = vector.broadcast %49 : vector<1x288xi1> to vector<4x288xi1>
    %51 = vector.broadcast %cst_40 : f32 to vector<4x288xf32>
    %52 = arith.select %50, %48, %51 : vector<4x288xi1>, vector<4x288xf32>
    %c0_41 = arith.constant 0 : index
    %c19_42 = arith.constant 19 : index
    %53 = vector.load %arg7[%c0_41, %c19_42] : memref<4x342xf32, #tpu.memory_space<vmem>>, vector<4x288xf32>
    tpu.vector_store %arg7[%c0_41, %c19_42], %52 {strides = array<i32>} : memref<4x342xf32, #tpu.memory_space<vmem>>, vector<4x288xf32>,
    %cst_43 = arith.constant 0.000000e+00 : f32
    %54 = vector.broadcast %cst_43 : f32 to vector<4x19xf32>
    %c0_44 = arith.constant 0 : index
    %c0_45 = arith.constant 0 : index
    %55 = vector.load %arg7[%c0_44, %c0_45] : memref<4x342xf32, #tpu.memory_space<vmem>>, vector<4x19xf32>
    tpu.vector_store %arg7[%c0_44, %c0_45], %54 {strides = array<i32>} : memref<4x342xf32, #tpu.memory_space<vmem>>, vector<4x19xf32>,
    %cst_46 = arith.constant 0.000000e+00 : f32
    %56 = vector.broadcast %cst_46 : f32 to vector<4x35xf32>
    %c0_47 = arith.constant 0 : index
    %c307 = arith.constant 307 : index
    %57 = vector.load %arg7[%c0_47, %c307] : memref<4x342xf32, #tpu.memory_space<vmem>>, vector<4x35xf32>
    tpu.vector_store %arg7[%c0_47, %c307], %56 {strides = array<i32>} : memref<4x342xf32, #tpu.memory_space<vmem>>, vector<4x35xf32>,
    %c0_48 = arith.constant 0 : index
    %c0_49 = arith.constant 0 : index
    %58 = vector.load %arg7[%c0_48, %c0_49] : memref<4x342xf32, #tpu.memory_space<vmem>>, vector<4x288xf32>
    %c0_50 = arith.constant 0 : index
    %c0_51 = arith.constant 0 : index
    %59 = vector.load %arg8[%c0_50, %c0_51] : memref<36x288xf32, #tpu.memory_space<vmem>>, vector<4x288xf32>
    tpu.vector_store %arg8[%c0_50, %c0_51], %58 {strides = array<i32>} : memref<36x288xf32, #tpu.memory_space<vmem>>, vector<4x288xf32>,
    %c0_52 = arith.constant 0 : index
    %c1_53 = arith.constant 1 : index
    %60 = vector.load %arg7[%c0_52, %c1_53] : memref<4x342xf32, #tpu.memory_space<vmem>>, vector<4x288xf32>
    %c4_54 = arith.constant 4 : index
    %c0_55 = arith.constant 0 : index
    %61 = vector.load %arg8[%c4_54, %c0_55] : memref<36x288xf32, #tpu.memory_space<vmem>>, vector<4x288xf32>
    tpu.vector_store %arg8[%c4_54, %c0_55], %60 {strides = array<i32>} : memref<36x288xf32, #tpu.memory_space<vmem>>, vector<4x288xf32>,
    %c0_56 = arith.constant 0 : index
    %c2_57 = arith.constant 2 : index
    %62 = vector.load %arg7[%c0_56, %c2_57] : memref<4x342xf32, #tpu.memory_space<vmem>>, vector<4x288xf32>
    %c8_58 = arith.constant 8 : index
    %c0_59 = arith.constant 0 : index
    %63 = vector.load %arg8[%c8_58, %c0_59] : memref<36x288xf32, #tpu.memory_space<vmem>>, vector<4x288xf32>
    tpu.vector_store %arg8[%c8_58, %c0_59], %62 {strides = array<i32>} : memref<36x288xf32, #tpu.memory_space<vmem>>, vector<4x288xf32>,
    %c0_60 = arith.constant 0 : index
    %c18_61 = arith.constant 18 : index
    %64 = vector.load %arg7[%c0_60, %c18_61] : memref<4x342xf32, #tpu.memory_space<vmem>>, vector<4x288xf32>
    %c12_62 = arith.constant 12 : index
    %c0_63 = arith.constant 0 : index
    %65 = vector.load %arg8[%c12_62, %c0_63] : memref<36x288xf32, #tpu.memory_space<vmem>>, vector<4x288xf32>
    tpu.vector_store %arg8[%c12_62, %c0_63], %64 {strides = array<i32>} : memref<36x288xf32, #tpu.memory_space<vmem>>, vector<4x288xf32>,
    %c0_64 = arith.constant 0 : index
    %c19_65 = arith.constant 19 : index
    %66 = vector.load %arg7[%c0_64, %c19_65] : memref<4x342xf32, #tpu.memory_space<vmem>>, vector<4x288xf32>
    %c16_66 = arith.constant 16 : index
    %c0_67 = arith.constant 0 : index
    %67 = vector.load %arg8[%c16_66, %c0_67] : memref<36x288xf32, #tpu.memory_space<vmem>>, vector<4x288xf32>
    tpu.vector_store %arg8[%c16_66, %c0_67], %66 {strides = array<i32>} : memref<36x288xf32, #tpu.memory_space<vmem>>, vector<4x288xf32>,
    %c0_68 = arith.constant 0 : index
    %c20_69 = arith.constant 20 : index
    %68 = vector.load %arg7[%c0_68, %c20_69] : memref<4x342xf32, #tpu.memory_space<vmem>>, vector<4x288xf32>
    %c20_70 = arith.constant 20 : index
    %c0_71 = arith.constant 0 : index
    %69 = vector.load %arg8[%c20_70, %c0_71] : memref<36x288xf32, #tpu.memory_space<vmem>>, vector<4x288xf32>
    tpu.vector_store %arg8[%c20_70, %c0_71], %68 {strides = array<i32>} : memref<36x288xf32, #tpu.memory_space<vmem>>, vector<4x288xf32>,
    %c0_72 = arith.constant 0 : index
    %c36_73 = arith.constant 36 : index
    %70 = vector.load %arg7[%c0_72, %c36_73] : memref<4x342xf32, #tpu.memory_space<vmem>>, vector<4x288xf32>
    %c24_74 = arith.constant 24 : index
    %c0_75 = arith.constant 0 : index
    %71 = vector.load %arg8[%c24_74, %c0_75] : memref<36x288xf32, #tpu.memory_space<vmem>>, vector<4x288xf32>
    tpu.vector_store %arg8[%c24_74, %c0_75], %70 {strides = array<i32>} : memref<36x288xf32, #tpu.memory_space<vmem>>, vector<4x288xf32>,
    %c0_76 = arith.constant 0 : index
    %c37_77 = arith.constant 37 : index
    %72 = vector.load %arg7[%c0_76, %c37_77] : memref<4x342xf32, #tpu.memory_space<vmem>>, vector<4x288xf32>
    %c28_78 = arith.constant 28 : index
    %c0_79 = arith.constant 0 : index
    %73 = vector.load %arg8[%c28_78, %c0_79] : memref<36x288xf32, #tpu.memory_space<vmem>>, vector<4x288xf32>
    tpu.vector_store %arg8[%c28_78, %c0_79], %72 {strides = array<i32>} : memref<36x288xf32, #tpu.memory_space<vmem>>, vector<4x288xf32>,
    %c0_80 = arith.constant 0 : index
    %c38_81 = arith.constant 38 : index
    %74 = vector.load %arg7[%c0_80, %c38_81] : memref<4x342xf32, #tpu.memory_space<vmem>>, vector<4x288xf32>
    %c32_82 = arith.constant 32 : index
    %c0_83 = arith.constant 0 : index
    %75 = vector.load %arg8[%c32_82, %c0_83] : memref<36x288xf32, #tpu.memory_space<vmem>>, vector<4x288xf32>
    tpu.vector_store %arg8[%c32_82, %c0_83], %74 {strides = array<i32>} : memref<36x288xf32, #tpu.memory_space<vmem>>, vector<4x288xf32>,
    %c0_84 = arith.constant 0 : index
    %c0_85 = arith.constant 0 : index
    %76 = vector.load %arg4[%c0_84, %c0_85] : memref<4x36xbf16, #tpu.memory_space<vmem>>, vector<4x36xbf16>
    %c0_86 = arith.constant 0 : index
    %c0_87 = arith.constant 0 : index
    %77 = vector.load %arg8[%c0_86, %c0_87] : memref<36x288xf32, #tpu.memory_space<vmem>>, vector<36x288xf32>
    %78 = arith.truncf %77 : vector<36x288xf32> to vector<36x288xbf16>
    %cst_88 = arith.constant dense<0.000000e+00> : vector<4x288xf32>
    %79 = tpu.matmul %76, %78, %cst_88 {dimension_numbers = #tpu.dot_dimension_numbers<[1], [0], [0], [1], [0, 0, 1, 1], [], []>} : vector<4x36xbf16>, vector<36x288xbf16>, vector<4x288xf32> -> vector<4x288xf32>
    %c0_89 = arith.constant 0 : index
    %c0_90 = arith.constant 0 : index
    %80 = vector.load %arg5[%c0_89, %c0_90] : memref<4x1xf32, #tpu.memory_space<vmem>>, vector<4x1xf32>
    %81 = vector.broadcast %80 : vector<4x1xf32> to vector<4x288xf32>
    %82 = arith.addf %79, %81 : vector<4x288xf32>
    %c0_91 = arith.constant 0 : index
    %c0_92 = arith.constant 0 : index
    %c19_93 = arith.constant 19 : index
    %83 = vector.load %arg1[%c0_91, %c0_92, %c19_93] : memref<1x4x342xf32, #tpu.memory_space<vmem>>, vector<1x4x288xf32>
    %84 = vector.shape_cast %83 : vector<1x4x288xf32> to vector<4x288xf32>
    %85 = arith.addf %82, %84 : vector<4x288xf32>
    %cst_94 = arith.constant 2.000000e-01 : f32
    %86 = vector.broadcast %cst_94 : f32 to vector<4x288xf32>
    %87 = arith.mulf %86, %85 : vector<4x288xf32>
    %88 = arith.maximumf %85, %87 : vector<4x288xf32>
    %c0_95 = arith.constant 0 : index
    %c0_96 = arith.constant 0 : index
    %c0_97 = arith.constant 0 : index
    %89 = vector.load %arg6[%c0_95, %c0_96, %c0_97] : memref<1x4x288xf32, #tpu.memory_space<vmem>>, vector<1x4x288xf32>
    %90 = vector.shape_cast %89 : vector<1x4x288xf32> to vector<4x288xf32>
    %91 = vector.shape_cast %88 : vector<4x288xf32> to vector<1x4x288xf32>
    tpu.vector_store %arg6[%c0_95, %c0_96, %c0_97], %91 {strides = array<i32>} : memref<1x4x288xf32, #tpu.memory_space<vmem>>, vector<1x4x288xf32>,
    return
  }
  func.func @transform_0(%arg0: i32) -> (i32, i32, i32) {
    %c0_i32 = arith.constant 0 : i32
    %c0_i32_0 = arith.constant 0 : i32
    %c0_i32_1 = arith.constant 0 : i32
    return %arg0, %c0_i32, %c0_i32_0 : i32, i32, i32
  }
  func.func @transform_1(%arg0: i32) -> (i32, i32) {
    %c0_i32 = arith.constant 0 : i32
    %c0_i32_0 = arith.constant 0 : i32
    %c0_i32_1 = arith.constant 0 : i32
    return %c0_i32, %c0_i32_0 : i32, i32
  }
  func.func @transform_2(%arg0: i32) -> (i32, i32) {
    %c0_i32 = arith.constant 0 : i32
    %c0_i32_0 = arith.constant 0 : i32
    %c0_i32_1 = arith.constant 0 : i32
    return %c0_i32, %c0_i32_0 : i32, i32
  }
  func.func @transform_3(%arg0: i32) -> (i32, i32) {
    %c0_i32 = arith.constant 0 : i32
    %c0_i32_0 = arith.constant 0 : i32
    %c0_i32_1 = arith.constant 0 : i32
    return %c0_i32, %c0_i32_0 : i32, i32
  }
  func.func @transform_4(%arg0: i32) -> (i32, i32) {
    %c0_i32 = arith.constant 0 : i32
    %c0_i32_0 = arith.constant 0 : i32
    %c0_i32_1 = arith.constant 0 : i32
    return %c0_i32, %c0_i32_0 : i32, i32
  }
  func.func @transform_5(%arg0: i32) -> (i32, i32, i32) {
    %c0_i32 = arith.constant 0 : i32
    %c0_i32_0 = arith.constant 0 : i32
    %c0_i32_1 = arith.constant 0 : i32
    return %arg0, %c0_i32, %c0_i32_0 : i32, i32, i32
  }
}

</mosaic_0001>

<bundles_post_ra>
// kernel: tpu_custom_call.1
= control target key start
LH: loop header
LB: loop body
LE: loop exit
PB: predicated region body
PF: predicated region fallthrough
CT: control target
= control target key end

     0   :  { %10 = vsyncpa [#allocation5], 0  ;;  %s1579_s0 = inlined_call_operand.hbm [shape: f32[2,4,342], index: 0, kind: input, shape index: {}]   ;;  %s1580_s1 = inlined_call_operand.vmem [shape: bf16[4,36], index: 1, kind: input, shape index: {}]   ;;  %s1581_s2 = inlined_call_operand.vmem [shape: f32[4,1], index: 2, kind: input, shape index: {}]   ;;  %s1582_s3 = inlined_call_operand.vmem [shape: bf16[4,36], index: 3, kind: input, shape index: {}]   ;;  %s1583_s4 = inlined_call_operand.vmem [shape: f32[4,1], index: 4, kind: input, shape index: {}]   ;;  %s1584_s5 = inlined_call_operand.hbm [shape: f32[2,4,288], index: 5, kind: output, shape index: {}]  }
   0x1   :  { %12 = vsyncpa [#allocation5 + $0x1], 0 }
   0x2   :  { %13 = vsyncpa [#allocation6], 0 }
   0x3   :  { %15 = vsyncpa [#allocation6 + $0x1], 0  ;;  %s1264_s18 = smov 0   ;;  %s1266_s19 = smov 0  }
   0x4   :  { %s1268_s20 = smov 0   ;;  %s1270_s21 = smov 0  }
   0x5 LB: > { %s1285_s22 = sadd.s32 4294967295, %s1218_s21   ;;  %s1010_s23 = sadd.s32 4294967294, %s1218_s21   ;;  %s1218_s21 = sphi %s1270_s21, %s1620_s21   ;;  %s1214_s20 = sphi %s1268_s20, %s1619_s20   ;;  %s1210_s19 = sphi %s1266_s19, %s1618_s19   ;;  %s1206_s18 = sphi %s1264_s18, %s1617_s18  }
   0x6   : > { %s1289_s24 = sadd.s32 1, %s1218_s21   ;;  %s28_s25 = sadd.s32 1, %s1214_s20 }
   0x7   : > { %s25_s26 = ssub.s32 %s1218_s21, %s1289_s24  ;;  %p35_p0 = scmp.ne.s32.totalorder %s1214_s20, %s1210_s19 }
   0x8   : > { %p26_p1 = scmp.eq.s32.totalorder %s25_s26, 0  ;;  %p36_p2 = scmp.eq.s32.totalorder %s1218_s21, 0 }
   0x9   : > { %p41_p3 = scmp.ne.s32.totalorder %s1210_s19, %s1206_s18  ;;  %p42_p4 = scmp.eq.s32.totalorder %s1285_s22, 0 }
   0xa   : > { %s1301_s27 = scalar_select %p26_p1, %s1214_s20, %s28_s25  }
   0xb   : > { %p37_p5 = por %p36_p2, %p35_p0  ;;  %p1303_p6 = por %p42_p4, %p41_p3 }
   0xc   : > { %p149_p7 = scmp.eq.s32.totalorder %s1285_s22, 1  ;;  %p155_p8 = scmp.eq.s32.totalorder %s1010_s23, 1 }
   0xd   : > { %s1593_s28 = scalar_select %p1303_p6, 1, 0 }
   0xe   : > { %p1068_p10 = scmp.lt.s32.totalorder %s1218_s21, 2  ;;  %p1310_p11 = por %p149_p7, %p35_p0 }
   0xf   : > { %p1314_p12 = por %p155_p8, %p41_p3  ;;  %s187_s6 = sand.u32 1, %s1214_s20  }
  0x10   : > { %s1594_s29 = scalar_select %p1310_p11, 1, 0 }
  0x11   : > { %s1595_s30 = scalar_select %p1314_p12, 1, 0 }
  0x12   : > { %s1053_s7 = smul.u32 192, %s1218_s21  ;;  %p1325_p13 = pnand %p1068_p10, %p37_p5 }
  0x13   : > { %s1052_s8 = smul.u32 12, %s187_s6  ;;  %s188_s15 = scalar_lea.sflag [#allocation5], %s187_s6 }
  0x14   : > { %s1323_s11 = scalar_lea.hbm %s1579_s0, %s1053_s7  ;;  %p1128_p3 = pneg %p1325_p13 }
  0x15   : > { %s191_s13 = scalar_lea.vmem [#allocation4], %s1052_s8  ;;  %s1126_s16 = scalar_lea.hbm %s1323_s11, 192 }
  0x16   : > { %s199_s14 = sshll.u32 %s191_s13, 4  ;;  %p1127_p2 = scmp.ne.s32.totalorder %s1323_s11, %s1126_s16  ;;  %s200_s14 = int_to_ptr.vmem [resolvable:$true] %s199_s14 }
  0x17   : > { %s1131_s25 = scalar_lea.hbm %s1579_s0, 384  ;;  %p1132_p5 = scmp.lt.s32.totalorder %s1323_s11, %s1579_s0 }
  0x18   : > { %p1129_p4 = pnand %p1128_p3, %p1127_p2  ;;  %p1133_p8 = scmp.lt.s32.totalorder %s1131_s25, %s1126_s16 }
  0x1a   : > { %p1130_p7 = pneg %p1129_p4  ;;  %p1134_p10 = por %p1133_p8, %p1132_p5 }
  0x1c   : > { %p1135_p9 = pnand %p1134_p10, %p1130_p7 }
  0x1e   : > { %1138 = shalt.err (!%p1135_p9)
}
  0x1f   : > { %s1139_s8 = scalar_lea.vmem %s200_s14, 192  ;;  %s1220_s6 = smov [#allocation4]  }
  0x20   : > { %p1140_p0 = scmp.ne.s32.totalorder %s200_s14, %s1139_s8  ;;  %s1144_s9 = sshll.u32 %s1220_s6, 4  ;;  %s1145_s9 = int_to_ptr.vmem [resolvable:$false] %s1144_s9 }
  0x21   : > { %s1146_s10 = scalar_lea.vmem %s1145_s9, 384  ;;  %p1147_p2 = scmp.lt.s32.totalorder %s200_s14, %s1145_s9 }
  0x22   : > { %p1142_p1 = pnand %p1140_p0, %p1128_p3  ;;  %p1148_p4 = scmp.lt.s32.totalorder %s1146_s10, %s1139_s8 }
  0x24   : > { %p1143_p12 = pneg %p1142_p1  ;;  %p1149_p11 = por %p1148_p4, %p1147_p2 }
  0x26   : > { %p1150_p6 = pnand %p1149_p11, %p1143_p12 }
  0x28   : > { %1153 = shalt.err (!%p1150_p6)
}
  0x29   : > { %1063 = dma.hbm_to_vmem [thread:$0]  (!%p1325_p13), %s1323_s11, 192, %s200_s14, %s188_s15  }
  0x2a   : > { %p1597_p9 = scmp.lt.s32.totalorder %s1218_s21, 3  ;;  %p1598_p7 = scmp.ge.s32.totalorder %s1218_s21, 1 }
  0x2c   : > { %p205_p5 = pnand %p1598_p7, %p1597_p9 }
  0x2d   : > { %s1350_s13 = sand.u32 (!%p205_p5), 1, %s1210_s19   ;;  %p1599_p6 = scmp.ne.s32.totalorder (!%p205_p5), %s1593_s28, 0 }
  0x2e   : > { %208 = sbr.rel (%p205_p5) target bundleno = 949 (0x3b5), region = 40  ;;  %s211_s17 = scalar_lea.sflag (!%p205_p5), [#allocation5], %s1350_s13 }
  0x2f   : > { %s1054_s16 = smul.u32 (!%p205_p5), 12, %s1350_s13 }
  0x31   : > { %s1356_s23 = scalar_lea.vmem (!%p205_p5), [#allocation4], %s1054_s16 }
  0x33   : > { %1197 = dma.done.wait (%p1599_p6), %s211_s17, 192  }
  0x34   : > { %1199 = vsyncadd (%p1599_p6), %s211_s17, 4294967104  ;;  %v1221_v0 = vmov 0.0   ;;  %v422_v1 = vld [vmem:[%s1356_s23 + $0x8] sm:$0xf]  ;;  %v1365_v2 = vld [vmem:[%s1356_s23] sm:$0xff]  ;;  %s1222_s11 = smov 90  }
  0x35   : > { %1032 = vmatprep.subr.bf16.mxu1 %v1221_v0  ;;  %430 = vrot.lane.b32.xlu1 %v422_v1, %s1222_s11  ;;  %v1372_v3 = vcombine.high %v1365_v2, %v1365_v2  ;;  %272 = vst [vmem:[#allocation3] sm:$0xf] %v1365_v2  ;;  %v340_v4 = vld [vmem:[%s1356_s23 + $0x8] sm:$0xf]  ;;  %s1223_s28 = smov 108   ;;  %s1224_s12 = smov 109   ;;  %v363_v9 = vcombine.low %v1365_v2, %v1365_v2 }
  0x36   : > { %426 = vrot.lane.b32.xlu0 %v1365_v2, %s1222_s11  ;;  %v1117_v5 = vld [vmem:[%s1356_s23 + $0x8] ss:$0 sps:$4 sm:$0xff]   ;;  %s1225_s14 = smov 92   ;;  %s1226_s15 = smov 91   ;;  %vm274_vm0 = vcmask 257024   ;;  %v1230_v13 = vmov 0  }
  0x37   : > { %273 = vst [vmem:[#allocation3 + $0x8] sm:$0xf] %v1372_v3  ;;  %v381_v6 = vld [vmem:[%s1356_s23 + $0x8] sm:$0xf]  ;;  %s1227_s25 = smov 127   ;;  %s1228_s26 = smov 126   ;;  %518 = vmatprep.mubr.bf16.mxu0 %v1230_v13  ;;  %1114 = vset.pattern.permute.xlu0 %v1230_v13 }
  0x38   : > { %v1118_v7 = vld [vmem:[%s1356_s23 + $0x8] ss:$0 sps:$4 sm:$0xff]   ;;  %s1229_s7 = smov 110   ;;  %vm1231_vm1 = vmmov 0   ;;  %v466_v14 = vld [vmem:[%s1581_s2] sm:$0xf] }
  0x39   : > { %367 = vrot.lane.b32.xlu1 %v1365_v2, %s1223_s28  ;;  %v268_v8 = vld [vmem:[%s1356_s23 + $0x8] sm:$0xf]  ;;  %1038 = vmatprep.mubr.msk.bf16.mxu1 %vm1231_vm1, %v1221_v0  ;;  %vm432_vm2 = vcmask 736256   ;;  %vm1592_vm3 = vcmask 891904   ;;  %vm476_vm4 = vcmask 1041408   ;;  %vm296_vm5 = vcmask 261124  }
  0x3a   : > { %348 = vrot.lane.b32.xlu0 %v340_v4, %s1224_s12  ;;  %275 = vst.msk [vmem:[#allocation3 + $0x10] sm:$0xf] %vm274_vm0, %v268_v8  ;;  %v1119_v10 = vld [vmem:[%s1356_s23 + $0x8] ss:$0 sps:$4 sm:$0xff]   ;;  %vm371_vm6 = vcmask 883712   ;;  %vm1591_vm7 = vcmask 752640  }
  0x3b   : > { %v299_v11 = vld [vmem:[%s1356_s23 + $0x8] sm:$0xf]  ;;  %vm412_vm8 = vcmask 744448   ;;  %vm1590_vm9 = vcmask 1039360   ;;  %vm1589_vm10 = vcmask 1031168   ;;  %vm1588_vm11 = vcmask 900096  }
  0x3c   : > { %v1120_v12 = vld [vmem:[%s1356_s23 + $0x8] ss:$0 sps:$4 sm:$0xff]   ;;  %vm1587_vm12 = vcmask 293888   ;;  %s1232_s17 = smov 19   ;;  %s926_s6 = scalar_lea.sflag [#allocation6], %s1350_s13 }
  0x3d   : > { %346 = vrot.lane.b32.xlu1 %v1372_v3, %s1224_s12  ;;  %p1614_p12 = scmp.ne.s32.totalorder %s1594_s29, 0  ;;  %s1233_s9 = smov [#allocation7]  }
  0x3e   : > { %428 = vrot.lane.b32.xlu0 %v1372_v3, %s1222_s11  ;;  %s1158_s10 = sshll.u32 %s1233_s9, 4  ;;  %s1159_s10 = int_to_ptr.vmem [resolvable:$false] %s1158_s10 }
  0x41   : > { %387 = vrot.lane.b32.xlu1 %v1372_v3, %s1225_s14 }
  0x42   : > { %369 = vrot.lane.b32.xlu0 %v1117_v5, %s1223_s28 }
  0x45   : > { %408 = vrot.lane.b32.xlu1 %v1365_v2, %s1226_s15 }
  0x46   : > { %389 = vrot.lane.b32.xlu0 %v381_v6, %s1225_s14 }
  0x49   : > { %344 = vrot.lane.b32.xlu1 %v1365_v2, %s1224_s12 }
  0x4a   : > { %410 = vrot.lane.b32.xlu0 %v1118_v7, %s1226_s15 }
  0x4d   : > { %385 = vrot.lane.b32.xlu1 %v1365_v2, %s1225_s14 }
  0x4e   : > { %365 = vrot.lane.b32.xlu0 %v363_v9, %s1223_s28 }
  0x51   : > { %284 = vrot.lane.b32.xlu1 %v1365_v2, %s1227_s25 }
  0x52   : > { %406 = vrot.lane.b32.xlu0 %v363_v9, %s1226_s15 }
  0x55   : > { %305 = vrot.lane.b32.xlu1 %v1372_v3, %s1228_s26 }
  0x56   : > { %286 = vrot.lane.b32.xlu0 %v1119_v10, %s1227_s25 }
  0x59   : > { %326 = vrot.lane.b32.xlu1 %v1365_v2, %s1229_s7 }
  0x5a   : > { %307 = vrot.lane.b32.xlu0 %v299_v11, %s1228_s26 }
  0x5d   : > { %282 = vrot.lane.b32.xlu1 %v363_v9, %s1227_s25 }
  0x5e   : > { %328 = vrot.lane.b32.xlu0 %v1120_v12, %s1229_s7 }
  0x61   : > { %324 = vrot.lane.b32.xlu1 %v363_v9, %s1229_s7 }
  0x62   : > { %303 = vrot.lane.b32.xlu0 %v1365_v2, %s1228_s26 }
  0x66   : > { %469 = vperm.xlu0 %1114, %v466_v14  }
  0xa7   : > { %v431_v15 = vpop.permute.xlu1 %430 }
  0xa8   : > { %v427_v16 = vpop.permute.xlu0 %426  ;;  %440 = vst.msk [vmem:[#allocation3 + $0x70] sm:$0xf] %vm274_vm0, %v431_v15 }
  0xab   : > { %v368_v17 = vpop.permute.xlu1 %367 }
  0xac   : > { %v349_v18 = vpop.permute.xlu0 %348 }
  0xad   : > { %358 = vst.msk [vmem:[#allocation3 + $0x40] sm:$0xf] %vm274_vm0, %v349_v18 }
  0xaf   : > { %v347_v20 = vpop.permute.xlu1 %346  ;;  %v456_v21 = vld [vmem:[#allocation3 + $0x70] sm:$0xf] }
  0xb0   : > { %v429_v19 = vpop.permute.xlu0 %428  ;;  %v352_v24 = vsel %vm1592_vm3, %v347_v20, %v349_v18  ;;  %v465_v25 = vpack.c.bf16 %v456_v21, %v456_v21  ;;  %v441_v18 = vld [vmem:[%s1580_s1] sm:$0x3] }
  0xb1   : > { %v433_v22 = vsel %vm432_vm2, %v427_v16, %v429_v19  ;;  %v434_v23 = vsel %vm432_vm2, %v429_v19, %v431_v15  ;;  %357 = vst [vmem:[#allocation3 + $0x38] sm:$0xf] %v352_v24 }
  0xb2   : > { %438 = vst [vmem:[#allocation3 + $0x60] sm:$0xf] %v433_v22  ;;  %439 = vst [vmem:[#allocation3 + $0x68] sm:$0xf] %v434_v23  ;;  %v484_v26 = vsel %vm476_vm4, %v465_v25, 0  ;;  %v242_v22 = vlaneseq }
  0xb3   : > { %1033 = vmatpush3.bf16.msra.mxu1 %v484_v26  ;;  %v388_v28 = vpop.permute.xlu1 %387 }
  0xb4   : > { %v370_v27 = vpop.permute.xlu0 %369  ;;  %1034 = vmatprep.subr.bf16.mxu1 %v1221_v0  ;;  %v243_v23 = vand.u32 127, %v242_v22  ;;  %v795_v22 = vld [vmem:[%s1583_s4] sm:$0xf] }
  0xb5   : > { %v373_v29 = vsel %vm371_vm6, %v368_v17, %v370_v27  ;;  %379 = vst.msk [vmem:[#allocation3 + $0x40] sm:$0xf0] %vm296_vm5, %v370_v27 }
  0xb6   : > { %378 = vst [vmem:[#allocation3 + $0x38] sm:$0xf0] %v373_v29  ;;  %v244_v24 = vadd.s32 128, %v243_v23  ;;  %v246_v25 = vcvt.s32.f32 %v243_v23  ;;  %v245_v27 = vadd.s32 256, %v243_v23  ;;  %v895_v23 = vld [vmem:[%s1356_s23 + $0x8] sm:$0xf] }
  0xb7   : > { %v409_v31 = vpop.permute.xlu1 %408 }
  0xb8   : > { %v390_v30 = vpop.permute.xlu0 %389  ;;  %v247_v26 = vcvt.s32.f32 %v244_v24 }
  0xb9   : > { %v393_v32 = vsel %vm1591_vm7, %v388_v28, %v390_v30  ;;  %399 = vst.msk [vmem:[#allocation3 + $0x58] sm:$0xf] %vm274_vm0, %v390_v30  ;;  %v455_v33 = vld [vmem:[#allocation3 + $0x68] sm:$0xf]  ;;  %v454_v34 = vld [vmem:[#allocation3 + $0x60] sm:$0xf]  ;;  %v248_v30 = vcvt.s32.f32 %v245_v27 }
  0xba   : > { %398 = vst [vmem:[#allocation3 + $0x50] sm:$0xf] %v393_v32  ;;  %v464_v35 = vpack.c.bf16 %v455_v33, %v455_v33  ;;  %v463_v36 = vpack.c.bf16 %v454_v34, %v454_v34  ;;  %v250_v29 = vadd.f32 0.5, %v247_v26 }
  0xbb   : > { %v345_v38 = vpop.permute.xlu1 %344  ;;  %v251_v33 = vadd.f32 0.5, %v248_v30 }
  0xbc   : > { %1015 = vmatprep.subr.msk.bf16.mxu0 %vm476_vm4, %v464_v35  ;;  %v411_v37 = vpop.permute.xlu0 %410  ;;  %v478_v39 = vsel %vm476_vm4, %v463_v36, 0  ;;  %v351_v41 = vsel %vm1592_vm3, %v345_v38, %v347_v20  ;;  %v450_v48 = vld [vmem:[#allocation3 + $0x40] sm:$0xff]  ;;  %v253_v32 = vmul.f32 0.055555556, %v250_v29  ;;  %vm604_vm3 = vcmask 699800  }
  0xbd   : > { %v414_v40 = vsel %vm412_vm8, %v409_v31, %v411_v37  ;;  %420 = vst.msk [vmem:[#allocation3 + $0x58] sm:$0xf0] %vm296_vm5, %v411_v37  ;;  %497 = vmatpush1.bf16.msra.mxu0 %v478_v39  ;;  %356 = vst [vmem:[#allocation3 + $0x30] sm:$0xf] %v351_v41  ;;  %v449_v52 = vld [vmem:[#allocation3 + $0x38] sm:$0xff] }
  0xbe   : > { %419 = vst [vmem:[#allocation3 + $0x50] sm:$0xf0] %v414_v40  ;;  %v256_v35 = vfloor.f32 %v253_v32  ;;  %v254_v37 = vmul.f32 0.055555556, %v251_v33 }
  0xbf   : > { %v386_v43 = vpop.permute.xlu1 %385 }
  0xc0   : > { %v366_v42 = vpop.permute.xlu0 %365  ;;  %v392_v45 = vsel %vm1591_vm7, %v386_v43, %v388_v28  ;;  %v249_v28 = vadd.f32 0.5, %v246_v25  ;;  %v257_v43 = vfloor.f32 %v254_v37  ;;  %vm600_vm7 = vcmask 412672  }
  0xc1   : > { %v372_v44 = vsel %vm371_vm6, %v366_v42, %v368_v17  ;;  %397 = vst [vmem:[#allocation3 + $0x48] sm:$0xf] %v392_v45 }
  0xc2   : > { %377 = vst [vmem:[#allocation3 + $0x30] sm:$0xf0] %v372_v44 }
  0xc3   : > { %v285_v47 = vpop.permute.xlu1 %284 }
  0xc4   : > { %v407_v46 = vpop.permute.xlu0 %406  ;;  %v453_v49 = vld [vmem:[#allocation3 + $0x58] sm:$0xff] }
  0xc5   : > { %v413_v50 = vsel %vm412_vm8, %v407_v46, %v409_v31  ;;  %v462_v51 = vpack.c.bf16 %v453_v49, %v450_v48  ;;  %v452_v53 = vld [vmem:[#allocation3 + $0x50] sm:$0xff]  ;;  %v252_v31 = vmul.f32 0.055555556, %v249_v28 }
  0xc6   : > { %418 = vst [vmem:[#allocation3 + $0x48] sm:$0xf0] %v413_v50  ;;  %v461_v54 = vpack.c.bf16 %v452_v53, %v449_v52  ;;  %v260_v53 = vmul.f32 18.0, %v257_v43 }
  0xc7   : > { %1035 = vmatpush3.bf16.msra.mxu1 %v462_v51  ;;  %v306_v56 = vpop.permute.xlu1 %305  ;;  %v255_v34 = vfloor.f32 %v252_v31 }
  0xc8   : > { %498 = vmatprep.subr.bf16.mxu0 %v461_v54  ;;  %v287_v55 = vpop.permute.xlu0 %286  ;;  %1036 = vmatprep.subr.bf16.mxu1 %v1221_v0 }
  0xc9   : > { %v290_v57 = vsel %vm1590_vm9, %v285_v47, %v287_v55  ;;  %297 = vst.msk [vmem:[#allocation3 + $0x10] sm:$0xf0] %vm296_vm5, %v287_v55  ;;  %v448_v61 = vld [vmem:[#allocation3 + $0x30] sm:$0xff]  ;;  %v258_v40 = vmul.f32 18.0, %v255_v34 }
  0xca   : > { %295 = vst [vmem:[#allocation3 + $0x8] sm:$0xf0] %v290_v57 }
  0xcb   : > { %v327_v59 = vpop.permute.xlu1 %326  ;;  %v261_v46 = vsub.f32 %v246_v25, %v258_v40 }
  0xcc   : > { %v308_v58 = vpop.permute.xlu0 %307 }
  0xcd   : > { %v311_v60 = vsel %vm1589_vm10, %v306_v56, %v308_v58  ;;  %317 = vst.msk [vmem:[#allocation3 + $0x28] sm:$0xf] %vm274_vm0, %v308_v58  ;;  %v451_v62 = vld [vmem:[#allocation3 + $0x48] sm:$0xff]  ;;  %vm264_vm13 = vcmp.lt.f32.partialorder %v261_v46, 16.0 }
  0xce   : > { %316 = vst [vmem:[#allocation3 + $0x20] sm:$0xf] %v311_v60  ;;  %v460_v63 = vpack.c.bf16 %v451_v62, %v448_v61 }
  0xcf   : > { %v283_v4 = vpop.permute.xlu1 %282 }
  0xd0   : > { %499 = vmatpush1.bf16.msra.mxu0 %v460_v63  ;;  %v329_v1 = vpop.permute.xlu0 %328  ;;  %v289_v6 = vsel %vm1590_vm9, %v283_v4, %v285_v47  ;;  %v444_v11 = vld [vmem:[#allocation3 + $0x10] sm:$0xff]  ;;  %vm602_vm9 = vcmask 150528  }
  0xd1   : > { %v332_v5 = vsel %vm1588_vm11, %v327_v59, %v329_v1  ;;  %338 = vst.msk [vmem:[#allocation3 + $0x28] sm:$0xf0] %vm296_vm5, %v329_v1  ;;  %294 = vst [vmem:[#allocation3] sm:$0xf0] %v289_v6  ;;  %v443_v15 = vld [vmem:[#allocation3 + $0x8] sm:$0xff] }
  0xd2   : > { %337 = vst [vmem:[#allocation3 + $0x20] sm:$0xf0] %v332_v5 }
  0xd3   : > { %v325_v8 = vpop.permute.xlu1 %324 }
  0xd4   : > { %v304_v7 = vpop.permute.xlu0 %303  ;;  %v331_v10 = vsel %vm1588_vm11, %v325_v8, %v327_v59  ;;  %v263_v59 = vsub.f32 %v248_v30, %v260_v53  ;;  %vm591_vm11 = vcmask 154624  }
  0xd5   : > { %v310_v9 = vsel %vm1589_vm10, %v304_v7, %v306_v56  ;;  %336 = vst [vmem:[#allocation3 + $0x18] sm:$0xf0] %v331_v10 }
  0xd6   : > { %315 = vst [vmem:[#allocation3 + $0x18] sm:$0xf] %v310_v9  ;;  %vm266_vm15 = vcmp.lt.f32.partialorder %v263_v59, 16.0 }
  0xd8   : > { %v447_v12 = vld [vmem:[#allocation3 + $0x28] sm:$0xff]  ;;  %v442_v19 = vld [vmem:[#allocation3] sm:$0xff] }
  0xd9   : > { %v459_v14 = vpack.c.bf16 %v447_v12, %v444_v11  ;;  %v446_v16 = vld [vmem:[#allocation3 + $0x20] sm:$0xff] }
  0xda   : > { %v458_v17 = vpack.c.bf16 %v446_v16, %v443_v15 }
  0xdb   : > { %1037 = vmatpush3.bf16.msra.mxu1 %v459_v14 }
  0xdc   : > { %500 = vmatprep.subr.bf16.mxu0 %v458_v17  ;;  %1042 = vmatprep.subr.bf16.mxu1 %v1221_v0 }
  0xdd   : > { %v445_v20 = vld [vmem:[#allocation3 + $0x18] sm:$0xff] }
  0xde   : > { %v457_v21 = vpack.c.bf16 %v445_v20, %v442_v19  ;;  %1039 = vmatmul.mubr.msk.bf16.vlgmr.msra.gmra.mxu1 %vm1587_vm12, %v441_v18 }
  0xdf   : > { %1048 = vmatprep.mubr.msk.bf16.mxu1 %vm1231_vm1, %v1221_v0  ;;  %vm596_vm1 = vcmask 1043608  }
  0xe0   : > { %501 = vmatpush1.bf16.msra.mxu0 %v457_v21 }
  0xe1   : > { %v470_v39 = vpop.permute.xlu0 %469 }
  0xe3   : > { %1016 = vmatmul.mubr.msk.bf16.vlgmr.msra.gmra.mxu0 %vm1587_vm12, %v441_v18  ;;  %vm597_vm12 = vcmask 1047556  }
  0xe4   : > { %845 = vmatprep.mubr.bf16.mxu0 %v1230_v13  ;;  %v259_v13 = vmul.f32 18.0, %v256_v35  ;;  %vm598_vm10 = vmor %vm597_vm12, %vm596_vm1 }
  0xe6   : > { %v262_v47 = vsub.f32 %v247_v26, %v259_v13 }
  0xe8   : > { %vm265_vm14 = vcmp.lt.f32.partialorder %v262_v47, 16.0 }
 0x19e   : > { %v561_v36 = vpop.f32.mrf.mxu1 }
 0x19f   : > { %v562_v50 = vadd.f32 %v561_v36, %v470_v39 }
 0x1a0   : > { %v1040_v38 = vpop.f32.mrf.mxu1 }
 0x1a1   : > { %v569_v57 = vmul.f32 0.2, %v562_v50 }
 0x1a2   : > { %v564_v41 = vpop.f32.mrf.mxu1 }
 0x1a3   : > { %v520_v42 = vpop.f32.mrf.mxu0  ;;  %v572_v63 = vmax.f32 %v562_v50, %v569_v57 }
 0x1a4   : > { %v521_v44 = vadd.f32 %v520_v42, %v470_v39  ;;  %v1041_v45 = vpop.f32.mrf.mxu1 }
 0x1a5   : > { %v522_v48 = vpop.f32.mrf.mxu0  ;;  %v581_v1 = vsel %vm266_vm15, %v572_v63, 0.0 }
 0x1a6   : > { %v567_v49 = vmul.f32 0.2, %v521_v44  ;;  %v523_v51 = vadd.f32 %v522_v48, %v470_v39 }
 0x1a7   : > { %v524_v52 = vpop.f32.mrf.mxu0 }
 0x1a8   : > { %v570_v54 = vmax.f32 %v521_v44, %v567_v49  ;;  %v568_v55 = vmul.f32 0.2, %v523_v51 }
 0x1a9   : > { %v525_v56 = vpop.f32.mrf.mxu0 }
 0x1aa   : > { %v571_v58 = vmax.f32 %v523_v51, %v568_v55  ;;  %v579_v60 = vsel %vm264_vm13, %v570_v54, 0.0 }
 0x1ac   : > { %v580_v61 = vsel %vm265_vm14, %v571_v58, 0.0 }
 0x1ad   : > { %v585_v62 = vcombine.low %v579_v60, %v580_v61 }
 0x1af   : > { %586 = vrot.lane.b32.xlu1 %v585_v62, %s1232_s17 }
 0x1b3   : > { %588 = vrot.lane.b32.xlu1 %v581_v1, %s1232_s17 }
 0x221   : > { %v587_v4 = vpop.permute.xlu1 %586 }
 0x222   : > { %v590_v5 = vrot.slane %v587_v4, 4 }
 0x224   : > { %v592_v6 = vsel %vm591_vm11, %v590_v5, %v587_v4 }
 0x225   : > { %599 = vst.msk [vmem:[#allocation2] sm:$0xff] %vm598_vm10, %v592_v6  ;;  %v589_v7 = vpop.permute.xlu1 %588  ;;  %vm1606_vm10 = vcmask 900096  }
 0x226   : > { %603 = vst.msk [vmem:[#allocation2] sm:$0xf] %vm602_vm9, %v1221_v0  ;;  %v593_v8 = vsel %vm591_vm11, %v590_v5, %v589_v7  ;;  %vm1609_vm12 = vmmov %vm1606_vm10 }
 0x227   : > { %601 = vst.msk [vmem:[#allocation2 + $0x8] sm:$0xf] %vm600_vm7, %v593_v8 }
 0x228   : > { %605 = vst.msk [vmem:[#allocation2 + $0x8] sm:$0xf] %vm604_vm3, %v1221_v0  ;;  %vm1600_vm3 = vcmask 891904  }
 0x229   : > { %vm1601_vm7 = vmmov %vm1600_vm3 }
 0x22a   : > { %vm1612_vm14 = vmmov %vm1600_vm3 }
 0x22b   : > { %vm1613_vm15 = vmmov %vm1600_vm3 }
 0x22d   : > { %v606_v9 = vld [vmem:[#allocation2] sm:$0xff] }
 0x22e   : > { %v609_v10 = vcombine.high %v606_v9, %v606_v9  ;;  %611 = vst [vmem:[#allocation3] sm:$0xf] %v606_v9  ;;  %756 = vrot.lane.b32.xlu0 %v606_v9, %s1222_s11  ;;  %700 = vrot.lane.b32.xlu1 %v606_v9, %s1223_s28  ;;  %v696_v19 = vcombine.low %v606_v9, %v606_v9 }
 0x22f   : > { %v607_v11 = vld [vmem:[#allocation2 + $0x8] sm:$0xf] }
 0x230   : > { %v752_v12 = vld [vmem:[#allocation2 + $0x8] sm:$0xf]  ;;  %612 = vst [vmem:[#allocation3 + $0x8] sm:$0xf] %v609_v10  ;;  %613 = vst.msk [vmem:[#allocation3 + $0x10] sm:$0xf] %vm274_vm0, %v607_v11 }
 0x231   : > { %v674_v14 = vld [vmem:[#allocation2 + $0x8] sm:$0xf] }
 0x232   : > { %739 = vrot.lane.b32.xlu1 %v606_v9, %s1226_s15  ;;  %760 = vrot.lane.b32.xlu0 %v752_v12, %s1222_s11  ;;  %v713_v15 = vld [vmem:[#allocation2 + $0x8] sm:$0xf] }
 0x233   : > { %v635_v16 = vld [vmem:[#allocation2 + $0x8] sm:$0xf] }
 0x234   : > { %v1122_v17 = vld [vmem:[#allocation2 + $0x8] ss:$0 sps:$4 sm:$0xff]  }
 0x235   : > { %v1123_v18 = vld [vmem:[#allocation2 + $0x8] ss:$0 sps:$4 sm:$0xff]  }
 0x236   : > { %678 = vrot.lane.b32.xlu1 %v606_v9, %s1224_s12  ;;  %682 = vrot.lane.b32.xlu0 %v674_v14, %s1224_s12  ;;  %v1124_v20 = vld [vmem:[#allocation2 + $0x8] ss:$0 sps:$4 sm:$0xff]  }
 0x237   : > { %v1125_v21 = vld [vmem:[#allocation2 + $0x8] ss:$0 sps:$4 sm:$0xff]  }
 0x23a   : > { %717 = vrot.lane.b32.xlu1 %v606_v9, %s1225_s14  ;;  %721 = vrot.lane.b32.xlu0 %v713_v15, %s1225_s14 }
 0x23e   : > { %622 = vrot.lane.b32.xlu1 %v606_v9, %s1227_s25  ;;  %643 = vrot.lane.b32.xlu0 %v635_v16, %s1228_s26 }
 0x242   : > { %661 = vrot.lane.b32.xlu1 %v606_v9, %s1229_s7  ;;  %702 = vrot.lane.b32.xlu0 %v1122_v17, %s1223_s28 }
 0x246   : > { %758 = vrot.lane.b32.xlu1 %v609_v10, %s1222_s11  ;;  %741 = vrot.lane.b32.xlu0 %v1123_v18, %s1226_s15 }
 0x24a   : > { %680 = vrot.lane.b32.xlu1 %v609_v10, %s1224_s12  ;;  %698 = vrot.lane.b32.xlu0 %v696_v19, %s1223_s28 }
 0x24e   : > { %719 = vrot.lane.b32.xlu1 %v609_v10, %s1225_s14  ;;  %737 = vrot.lane.b32.xlu0 %v696_v19, %s1226_s15  ;;  %s240_s14 = scalar_lea.vmem [#allocation7], %s1054_s16  ;;  %s1055_s15 = smul.u32 192, %s1285_s22 }
 0x24f   : > { %s1160_s22 = scalar_lea.vmem %s1159_s10, 384 }
 0x250   : > { %s938_s8 = scalar_lea.hbm %s1584_s5, %s1055_s15 }
 0x252   : > { %641 = vrot.lane.b32.xlu1 %v609_v10, %s1228_s26  ;;  %624 = vrot.lane.b32.xlu0 %v1124_v20, %s1227_s25 }
 0x256   : > { %620 = vrot.lane.b32.xlu1 %v696_v19, %s1227_s25  ;;  %663 = vrot.lane.b32.xlu0 %v1125_v21, %s1229_s7  ;;  %s940_s25 = sshll.u32 %s240_s14, 4  ;;  %s941_s25 = int_to_ptr.vmem [resolvable:$true] %s940_s25 }
 0x257   : > { %s1154_s16 = scalar_lea.vmem %s941_s25, 192  ;;  %p1161_p1 = scmp.lt.s32.totalorder %s941_s25, %s1159_s10 }
 0x258   : > { %p1155_p11 = scmp.ne.s32.totalorder %s941_s25, %s1154_s16  ;;  %p1162_p3 = scmp.lt.s32.totalorder %s1160_s22, %s1154_s16 }
 0x25a   : > { %659 = vrot.lane.b32.xlu1 %v696_v19, %s1229_s7  ;;  %639 = vrot.lane.b32.xlu0 %v606_v9, %s1228_s26  ;;  %p1156_p13 = pnand %p1155_p11, %p1614_p12  ;;  %p1163_p8 = por %p1162_p3, %p1161_p1 }
 0x25c   : > { %p1157_p0 = pneg %p1156_p13 }
 0x25e   : > { %798 = vperm.xlu0 %1114, %v795_v22   ;;  %899 = vrot.lane.b32.xlu1 %v1365_v2, %s1224_s12  ;;  %p1164_p10 = pnand %p1163_p8, %p1157_p0 }
 0x262   : > { %903 = vrot.lane.b32.xlu1 %v895_v23, %s1224_s12  ;;  %901 = vrot.lane.b32.xlu0 %v1372_v3, %s1224_s12  ;;  %v770_v23 = vld [vmem:[%s1582_s3] sm:$0x3] }
 0x2a0   : > { %v757_v24 = vpop.permute.xlu0 %756  ;;  %v701_v25 = vpop.permute.xlu1 %700 }
 0x2a4   : > { %v761_v26 = vpop.permute.xlu0 %760  ;;  %v740_v27 = vpop.permute.xlu1 %739 }
 0x2a5   : > { %769 = vst.msk [vmem:[#allocation3 + $0x70] sm:$0xf] %vm274_vm0, %v761_v26 }
 0x2a8   : > { %v683_v28 = vpop.permute.xlu0 %682  ;;  %v679_v29 = vpop.permute.xlu1 %678 }
 0x2a9   : > { %691 = vst.msk [vmem:[#allocation3 + $0x40] sm:$0xf] %vm274_vm0, %v683_v28 }
 0x2ac   : > { %v722_v30 = vpop.permute.xlu0 %721  ;;  %v718_v31 = vpop.permute.xlu1 %717  ;;  %v785_v32 = vld [vmem:[#allocation3 + $0x70] sm:$0xf] }
 0x2ad   : > { %730 = vst.msk [vmem:[#allocation3 + $0x58] sm:$0xf] %vm274_vm0, %v722_v30  ;;  %v794_v2 = vpack.c.bf16 %v785_v32, %v785_v32 }
 0x2af   : > { %v811_v33 = vsel %vm476_vm4, %v794_v2, 0 }
 0x2b0   : > { %1043 = vmatpush3.bf16.msra.mxu1 %v811_v33  ;;  %v644_v3 = vpop.permute.xlu0 %643  ;;  %v623_v34 = vpop.permute.xlu1 %622 }
 0x2b1   : > { %652 = vst.msk [vmem:[#allocation3 + $0x28] sm:$0xf] %vm274_vm0, %v644_v3  ;;  %1044 = vmatprep.subr.bf16.mxu1 %v1221_v0 }
 0x2b4   : > { %v703_v35 = vpop.permute.xlu0 %702  ;;  %v1507_v36 = vpop.permute.xlu1 %661 }
 0x2b5   : > { %v705_v37 = vsel %vm371_vm6, %v701_v25, %v703_v35  ;;  %711 = vst.msk [vmem:[#allocation3 + $0x40] sm:$0xf0] %vm296_vm5, %v703_v35 }
 0x2b6   : > { %710 = vst [vmem:[#allocation3 + $0x38] sm:$0xf0] %v705_v37 }
 0x2b8   : > { %v742_v38 = vpop.permute.xlu0 %741  ;;  %v759_v39 = vpop.permute.xlu1 %758 }
 0x2b9   : > { %v744_v40 = vsel %vm412_vm8, %v740_v27, %v742_v38  ;;  %750 = vst.msk [vmem:[#allocation3 + $0x58] sm:$0xf0] %vm296_vm5, %v742_v38  ;;  %v762_v13 = vsel %vm432_vm2, %v757_v24, %v759_v39  ;;  %v763_v41 = vsel %vm432_vm2, %v759_v39, %v761_v26  ;;  %vm1602_vm2 = vcmask 752640  }
 0x2ba   : > { %749 = vst [vmem:[#allocation3 + $0x50] sm:$0xf0] %v744_v40  ;;  %767 = vst [vmem:[#allocation3 + $0x60] sm:$0xf] %v762_v13 }
 0x2bb   : > { %768 = vst [vmem:[#allocation3 + $0x68] sm:$0xf] %v763_v41  ;;  %vm1603_vm9 = vmmov %vm1602_vm2 }
 0x2bc   : > { %v699_v42 = vpop.permute.xlu0 %698  ;;  %v681_v43 = vpop.permute.xlu1 %680  ;;  %v779_v49 = vld [vmem:[#allocation3 + $0x40] sm:$0xff] }
 0x2bd   : > { %v704_v44 = vsel %vm371_vm6, %v699_v42, %v701_v25  ;;  %v684_v45 = vsel %vm1600_vm3, %v679_v29, %v681_v43  ;;  %v685_v46 = vsel %vm1601_vm7, %v681_v43, %v683_v28  ;;  %vm1604_vm6 = vcmask 1039360  }
 0x2be   : > { %709 = vst [vmem:[#allocation3 + $0x30] sm:$0xf0] %v704_v44  ;;  %689 = vst [vmem:[#allocation3 + $0x30] sm:$0xf] %v684_v45 }
 0x2bf   : > { %690 = vst [vmem:[#allocation3 + $0x38] sm:$0xf] %v685_v46 }
 0x2c0   : > { %v738_v47 = vpop.permute.xlu0 %737  ;;  %v720_v48 = vpop.permute.xlu1 %719  ;;  %v782_v50 = vld [vmem:[#allocation3 + $0x58] sm:$0xff] }
 0x2c1   : > { %v743_v51 = vsel %vm412_vm8, %v738_v47, %v740_v27  ;;  %v723_v52 = vsel %vm1602_vm2, %v718_v31, %v720_v48  ;;  %v724_v53 = vsel %vm1603_vm9, %v720_v48, %v722_v30  ;;  %v791_v54 = vpack.c.bf16 %v782_v50, %v779_v49  ;;  %v783_v56 = vld [vmem:[#allocation3 + $0x60] sm:$0xf] }
 0x2c2   : > { %v784_v55 = vld [vmem:[#allocation3 + $0x68] sm:$0xf]  ;;  %748 = vst [vmem:[#allocation3 + $0x48] sm:$0xf0] %v743_v51  ;;  %728 = vst [vmem:[#allocation3 + $0x48] sm:$0xf] %v723_v52  ;;  %v792_v58 = vpack.c.bf16 %v783_v56, %v783_v56 }
 0x2c3   : > { %729 = vst [vmem:[#allocation3 + $0x50] sm:$0xf] %v724_v53  ;;  %v793_v57 = vpack.c.bf16 %v784_v55, %v784_v55  ;;  %1045 = vmatpush3.bf16.msra.mxu1 %v791_v54  ;;  %vm1605_vm8 = vcmask 1031168  }
 0x2c4   : > { %v625_v59 = vpop.permute.xlu0 %624  ;;  %v642_v60 = vpop.permute.xlu1 %641  ;;  %v805_v61 = vsel %vm476_vm4, %v792_v58, 0  ;;  %1046 = vmatprep.subr.bf16.mxu1 %v1221_v0  ;;  %vm1608_vm11 = vmmov %vm1605_vm8 }
 0x2c5   : > { %1018 = vmatprep.subr.msk.bf16.mxu0 %vm476_vm4, %v793_v57  ;;  %v627_v62 = vsel %vm1604_vm6, %v623_v34, %v625_v59  ;;  %633 = vst.msk [vmem:[#allocation3 + $0x10] sm:$0xf0] %vm296_vm5, %v625_v59  ;;  %v646_v63 = vsel %vm1605_vm8, %v642_v60, %v644_v3  ;;  %vm1607_vm4 = vmmov %vm1604_vm6  ;;  %v777_v8 = vld [vmem:[#allocation3 + $0x30] sm:$0xff] }
 0x2c6   : > { %824 = vmatpush1.bf16.msra.mxu0 %v805_v61  ;;  %632 = vst [vmem:[#allocation3 + $0x8] sm:$0xf0] %v627_v62  ;;  %651 = vst [vmem:[#allocation3 + $0x20] sm:$0xf] %v646_v63  ;;  %v778_v5 = vld [vmem:[#allocation3 + $0x38] sm:$0xff] }
 0x2c8   : > { %v664_v1 = vpop.permute.xlu0 %663  ;;  %v621_v4 = vpop.permute.xlu1 %620 }
 0x2c9   : > { %v666_v6 = vsel %vm1606_vm10, %v1507_v36, %v664_v1  ;;  %672 = vst.msk [vmem:[#allocation3 + $0x28] sm:$0xf0] %vm296_vm5, %v664_v1  ;;  %v626_v7 = vsel %vm1607_vm4, %v621_v4, %v623_v34  ;;  %v780_v9 = vld [vmem:[#allocation3 + $0x48] sm:$0xff]  ;;  %vm1610_vm5 = vcmask 293888  }
 0x2ca   : > { %v781_v0 = vld [vmem:[#allocation3 + $0x50] sm:$0xff]  ;;  %671 = vst [vmem:[#allocation3 + $0x20] sm:$0xf0] %v666_v6  ;;  %631 = vst [vmem:[#allocation3] sm:$0xf0] %v626_v7  ;;  %v789_v11 = vpack.c.bf16 %v780_v9, %v777_v8 }
 0x2cb   : > { %v790_v10 = vpack.c.bf16 %v781_v0, %v778_v5  ;;  %vm1611_vm13 = vmmov %vm1610_vm5 }
 0x2cc   : > { %v640_v12 = vpop.permute.xlu0 %639  ;;  %v660_v14 = vpop.permute.xlu1 %659  ;;  %v773_v17 = vld [vmem:[#allocation3 + $0x10] sm:$0xff] }
 0x2cd   : > { %825 = vmatprep.subr.bf16.mxu0 %v790_v10  ;;  %v645_v15 = vsel %vm1608_vm11, %v640_v12, %v642_v60  ;;  %v665_v16 = vsel %vm1609_vm12, %v660_v14, %v1507_v36  ;;  %v772_v20 = vld [vmem:[#allocation3 + $0x8] sm:$0xff] }
 0x2ce   : > { %826 = vmatpush1.bf16.msra.mxu0 %v789_v11  ;;  %650 = vst [vmem:[#allocation3 + $0x18] sm:$0xf] %v645_v15  ;;  %670 = vst [vmem:[#allocation3 + $0x18] sm:$0xf0] %v665_v16 }
 0x2d0   : > { %v776_v18 = vld [vmem:[#allocation3 + $0x28] sm:$0xff]  ;;  %v900_v27 = vpop.permute.xlu1 %899 }
 0x2d1   : > { %v788_v19 = vpack.c.bf16 %v776_v18, %v773_v17  ;;  %v775_v21 = vld [vmem:[#allocation3 + $0x20] sm:$0xff] }
 0x2d2   : > { %v787_v22 = vpack.c.bf16 %v775_v21, %v772_v20  ;;  %v771_v24 = vld [vmem:[#allocation3] sm:$0xff] }
 0x2d3   : > { %1047 = vmatpush3.bf16.msra.mxu1 %v788_v19 }
 0x2d4   : > { %827 = vmatprep.subr.bf16.mxu0 %v787_v22  ;;  %v904_v30 = vpop.permute.xlu1 %903 }
 0x2d5   : > { %v774_v25 = vld [vmem:[#allocation3 + $0x18] sm:$0xff] }
 0x2d6   : > { %1049 = vmatmul.mubr.msk.bf16.vlgmr.msra.gmra.mxu1 %vm1610_vm5, %v770_v23  ;;  %v786_v26 = vpack.c.bf16 %v774_v25, %v771_v24 }
 0x2d8   : > { %828 = vmatpush1.bf16.msra.mxu0 %v786_v26 }
 0x2d9   : > { %v799_v28 = vpop.permute.xlu0 %798 }
 0x2db   : > { %1019 = vmatmul.mubr.msk.bf16.vlgmr.msra.gmra.mxu0 %vm1611_vm13, %v770_v23 }
 0x2dd   : > { %v902_v33 = vpop.permute.xlu0 %901 }
 0x2de   : > { %v905_v39 = vsel %vm1612_vm14, %v900_v27, %v902_v33  ;;  %v906_v40 = vsel %vm1613_vm15, %v902_v33, %v904_v30 }
 0x396   : > { %v888_v29 = vpop.f32.mrf.mxu1 }
 0x397   : > { %v889_v31 = vadd.f32 %v888_v29, %v799_v28 }
 0x398   : > { %v1050_v32 = vpop.f32.mrf.mxu1 }
 0x399   : > { %v912_v2 = vadd.f32 %v904_v30, %v889_v31 }
 0x39a   : > { %v891_v3 = vpop.f32.mrf.mxu1 }
 0x39b   : > { %v915_v34 = vmul.f32 0.2, %v912_v2  ;;  %v847_v35 = vpop.f32.mrf.mxu0 }
 0x39c   : > { %v848_v36 = vadd.f32 %v847_v35, %v799_v28  ;;  %v1051_v37 = vpop.f32.mrf.mxu1 }
 0x39d   : > { %v918_v38 = vmax.f32 %v912_v2, %v915_v34  ;;  %v849_v13 = vpop.f32.mrf.mxu0 }
 0x39e   : > { %v910_v41 = vadd.f32 %v905_v39, %v848_v36  ;;  %v850_v42 = vadd.f32 %v849_v13, %v799_v28 }
 0x39f   : > { %v851_v43 = vpop.f32.mrf.mxu0  ;;  %924 = vst.msk [vmem:[%s240_s14 + $0x8] sm:$0xf] %vm274_vm0, %v918_v38 }
 0x3a0   : > { %v913_v44 = vmul.f32 0.2, %v910_v41  ;;  %v911_v45 = vadd.f32 %v906_v40, %v850_v42 }
 0x3a1   : > { %v852_v46 = vpop.f32.mrf.mxu0 }
 0x3a2   : > { %v914_v47 = vmul.f32 0.2, %v911_v45  ;;  %v916_v48 = vmax.f32 %v910_v41, %v913_v44 }
 0x3a4   : > { %v917_v49 = vmax.f32 %v911_v45, %v914_v47 }
 0x3a6   : > { %v921_v50 = vcombine.low %v916_v48, %v917_v49 }
 0x3a8   : > { %923 = vst [vmem:[%s240_s14] sm:$0xff] %v921_v50 }
 0x3a9   : > { %1167 = shalt.err (!%p1164_p10)
}
 0x3aa   : > { %s1168_s17 = scalar_lea.hbm %s938_s8, 192  ;;  %s1172_s28 = scalar_lea.hbm %s1584_s5, 384 }
 0x3ab   : > { %p1169_p2 = scmp.ne.s32.totalorder %s938_s8, %s1168_s17  ;;  %p1173_p7 = scmp.lt.s32.totalorder %s938_s8, %s1584_s5 }
 0x3ac   : > { %p1174_p5 = scmp.lt.s32.totalorder %s1172_s28, %s1168_s17 }
 0x3ad   : > { %p1170_p4 = pnand %p1169_p2, %p1614_p12 }
 0x3ae   : > { %p1175_p6 = por %p1174_p5, %p1173_p7 }
 0x3af   : > { %p1171_p9 = pneg %p1170_p4 }
 0x3b1   : > { %p1176_p11 = pnand %p1175_p6, %p1171_p9 }
 0x3b3   : > { %1179 = shalt.err (!%p1176_p11)
}
 0x3b4   : > { %1058 = dma.vmem_to_hbm [thread:$0]  (%p1614_p12), %s941_s25, 192, %s938_s8, %s926_s6  }
 0x3b5 PF: > { %s952_s14 = sand.u32 1, %s1206_s18   ;;  %p1615_p13 = scmp.ne.s32.totalorder %s1595_s30, 0 }
 0x3b6   : > { %p1616_p0 = scmp.ge.s32.totalorder %s1218_s21, 2  ;;  %s953_s15 = scalar_lea.sflag [#allocation6], %s952_s14 }
 0x3b8   : > { %p1065_p1 = pnand %p1616_p0, %p1615_p13 }
 0x3ba   : > { %p1066_p3 = pneg %p1065_p1 }
 0x3bc   : > { %1201 = dma.done.wait (%p1066_p3), %s953_s15, 192  }
 0x3bd   : > { %1203 = vsyncadd (%p1066_p3), %s953_s15, 4294967104  ;;  %p18_p8 = scmp.ge.s32.totalorder %s1289_s24, 4   ;;  %s1617_s18 = smov %s1210_s19 }
 0x3be   : > { %s1618_s19 = smov %s1214_s20  ;;  %s1619_s20 = smov %s1301_s27 }
 0x3bf   : > { %s1620_s21 = smov %s1289_s24  ;;  %20 = sbr.rel (!%p18_p8) target bundleno = 5 (0x5), region = 85 }
 0x3c4   :  { %958 = vsyncpa [#allocation5], 1 }
 0x3c5   :  { %960 = vsyncpa [#allocation5 + $0x1], 1 }
 0x3c6   :  { %961 = vsyncpa [#allocation6], 1 }
 0x3c7   :  { %963 = vsyncpa [#allocation6 + $0x1], 1 }

</bundles_post_ra>
